<compile_context>
chip_gen: v7x
topology: tpu7x:2x2x1
jax: 0.10.0
libtpu: 0.0.40
codegen_flags: <defaults>
</compile_context>

<pallas_src>
import functools
import math

import jax
import jax.numpy as jnp
from jax.experimental import pallas as pl
from jax.experimental.pallas import tpu as pltpu


def _round_up(x, m):
    return ((x + m - 1) // m) * m


def _masked_kl_kernel(logits_ref, xlbl_ref, mask_ref, loss_ref, msum_ref, *,
                      scale_factor, label_smoothing, num_classes):
    i = pl.program_id(1)  # reduction axis (tiles within this core's row range)

    @pl.when(i == 0)
    def _():
        loss_ref[...] = jnp.zeros_like(loss_ref)
        msum_ref[...] = jnp.zeros_like(msum_ref)

    x = logits_ref[...].astype(jnp.float32)                      # (rt, C)
    if scale_factor != 1.0:
        x = x * jnp.float32(scale_factor)

    # log-softmax pieces
    m = jnp.max(x, axis=-1, keepdims=True)                       # (rt, 1) XLU
    z = x - m                                                    # VPU
    ez = jnp.exp(z)                                              # EUP

    # Wide lane sums on the MXU instead of VALU/XLU lane reduces
    # (the MXU / vex slot is otherwise idle in this kernel).
    ones_col = jnp.ones((num_classes, 1), dtype=jnp.float32)
    sum_ez = jnp.dot(ez, ones_col, preferred_element_type=jnp.float32)  # (rt,1)
    lse = jnp.log(sum_ez)                                        # (rt, 1)

    # log p at the label position: the label logit was gathered in the wrapper,
    # so no per-tile one-hot / iota / select is needed here.
    x_lbl = xlbl_ref[...]                                        # (rt, 1) f32, unscaled
    if scale_factor != 1.0:
        x_lbl = x_lbl * jnp.float32(scale_factor)
    logp_lbl = (x_lbl - m) - lse                                 # (rt, 1)

    # Smoothed-target algebra (all compile-time constants; target never built)
    t_on = 1.0 - label_smoothing
    t_off = label_smoothing / (num_classes - 1)
    const = 0.0                                                  # sum_c xlogy(target_c)
    if t_on > 0.0:
        const += t_on * math.log(t_on)
    if t_off > 0.0:
        const += (num_classes - 1) * t_off * math.log(t_off)

    # sum_c target_c * logp_c
    tlogp = jnp.float32(t_on - t_off) * logp_lbl
    if t_off > 0.0:
        sum_z = jnp.dot(z, ones_col, preferred_element_type=jnp.float32)
        sum_logp = sum_z - jnp.float32(num_classes) * lse
        tlogp = tlogp + jnp.float32(t_off) * sum_logp

    row_loss = -tlogp
    if const != 0.0:
        row_loss = jnp.float32(const) + row_loss                 # (rt, 1)

    # masked_fill semantics: keep rows where mask != 0, zero otherwise.
    # NOTE: select (not multiply) so garbage / NaN from the unpadded logits
    # edge block and padded rows is dropped.  Non-binary masks keep the FULL
    # (unweighted) loss for any mask != 0 while the denominator sums the mask
    # values -- this matches PyTorch masked_fill + mask.sum(), not a weighted
    # loss; do not "fix" it.
    mask = mask_ref[...]                                         # (rt, 1) f32
    loss_ref[...] += jnp.where(mask != 0.0, row_loss, jnp.float32(0.0))
    msum_ref[...] += mask


def masked_kl_divergence(logits, ori_labels, mask=None, *,
                         num_classes=1025, scale_factor=1.0,
                         label_smoothing=0.0, row_tile=1024,
                         core_parallel="auto"):
    """Pallas implementation of MaskedKLDivergence.forward. Returns a scalar."""
    B, T, C = logits.shape
    assert C == num_classes
    N = B * T

    if mask is None:
        mask_f = jnp.ones((N,), dtype=jnp.float32)
    else:
        # TODO(synk): the (B,)-length mask path (make_non_pad_mask) is not
        # implemented; only (B, T) / flat 0-1 masks (or mask=None) are supported.
        mask_f = mask.reshape(-1).astype(jnp.float32)

    # Keep the caller's dtype for the big array (bf16 halves HBM traffic on
    # mem-bound v5e/v6e); the kernel casts each tile to f32 after load.
    logits2 = logits.reshape(N, C)
    labels2 = ori_labels.reshape(N, 1).astype(jnp.int32)
    mask2 = mask_f.reshape(N, 1)

    # Gather the label logit per row outside the kernel (reads only N elems),
    # replacing the in-kernel one-hot select over the full (rt, C) tile.
    xlbl2 = jnp.take_along_axis(logits2, labels2, axis=-1).astype(jnp.float32)

    # Tile size: large (amortizes ~0.35 us per-grid-step overhead), clamped for
    # tiny inputs, rounded to the sublane packing of the logits dtype.
    itemsize = jnp.dtype(logits.dtype).itemsize
    sub = 8 * max(1, 4 // itemsize)          # f32: 8, bf16: 16, 8-bit: 32
    rt = _round_up(min(int(row_tile), _round_up(N, sub)), sub)
    n_tiles = pl.cdiv(N, rt)

    # Optional real multi-TensorCore split (v7x): only when the device reports
    # more than one core; single-TC v5e/v6e keep the proven single-core path.
    if core_parallel == "auto":
        try:
            n_tc = int(getattr(jax.devices()[0], "num_cores", 1))
        except Exception:
            n_tc = 1
    else:
        n_tc = 2 if core_parallel else 1
    G = n_tc if (n_tc > 1 and n_tiles % n_tc == 0) else 1
    tps = n_tiles // G

    # Pad the cheap per-row arrays so they never read out of bounds; padded
    # rows carry mask == 0 and therefore contribute nothing to either sum.
    # The large logits array is NOT padded: any garbage in partially-OOB edge
    # rows is dropped by the where(mask != 0, ...) select in the kernel.
    N_pad = n_tiles * rt
    if N_pad != N:
        pad = N_pad - N
        xlbl2 = jnp.pad(xlbl2, ((0, pad), (0, 0)))
        mask2 = jnp.pad(mask2, ((0, pad), (0, 0)))

    kernel = functools.partial(
        _masked_kl_kernel,
        scale_factor=float(scale_factor),
        label_smoothing=float(label_smoothing),
        num_classes=int(num_classes),
    )

    cost = pl.CostEstimate(
        flops=6 * N * C,
        transcendentals=N * C,
        bytes_accessed=N * C * itemsize + N_pad * 4 * 2 + G * rt * 4 * 2,
    )

    if G > 1:
        dims = (pltpu.CORE_PARALLEL, pltpu.ARBITRARY)
    else:
        dims = ("arbitrary", "arbitrary")

    loss_parts, mask_parts = pl.pallas_call(
        kernel,
        out_shape=(jax.ShapeDtypeStruct((G * rt, 1), jnp.float32),
                   jax.ShapeDtypeStruct((G * rt, 1), jnp.float32)),
        grid_spec=pltpu.PrefetchScalarGridSpec(
            num_scalar_prefetch=0,
            grid=(G, tps),
            in_specs=[
                pl.BlockSpec((rt, C), lambda p, i: (p * tps + i, 0)),
                pl.BlockSpec((rt, 1), lambda p, i: (p * tps + i, 0)),
                pl.BlockSpec((rt, 1), lambda p, i: (p * tps + i, 0)),
            ],
            out_specs=(pl.BlockSpec((rt, 1), lambda p, i: (p, 0)),
                       pl.BlockSpec((rt, 1), lambda p, i: (p, 0)))),
        compiler_params=pltpu.CompilerParams(
            dimension_semantics=dims,
            vmem_limit_bytes=48 * 1024 * 1024),
        cost_estimate=cost,
    )(logits2, xlbl2, mask2)

    return jnp.sum(loss_parts) / jnp.sum(mask_parts)


def _reference(logits, labels, mask, *, num_classes, scale_factor, label_smoothing):
    B, T, C = logits.shape
    x = logits.reshape(-1, C).astype(jnp.float32) * scale_factor
    logp = jax.nn.log_softmax(x, axis=-1)
    lbl = labels.reshape(-1)
    t_off = label_smoothing / (num_classes - 1)
    t_on = 1.0 - label_smoothing
    target = jnp.full_like(logp, t_off).at[jnp.arange(lbl.shape[0]), lbl].set(t_on)
    xlogy_t = jnp.where(target > 0, target * jnp.log(jnp.maximum(target, 1e-38)), 0.0)
    per = xlogy_t - target * logp
    m = mask.reshape(-1, 1).astype(jnp.float32)
    per = jnp.where(m != 0, per, 0.0)
    return per.sum() / m.sum()


if __name__ == "__main__":
    # small shapes consistent with the module: (B, T, num_classes), labels (B, T), mask (B, T)
    B, T = 2, 8
    NUM_CLASSES = 1025          # config default

    key = jax.random.PRNGKey(0)
    k1, k2, k3 = jax.random.split(key, 3)
    logits = jax.random.normal(k1, (B, T, NUM_CLASSES), dtype=jnp.float32)
    ori_labels = jax.random.randint(k2, (B, T), 0, NUM_CLASSES, dtype=jnp.int32)
    mask = (jax.random.uniform(k3, (B, T)) > 0.25).astype(jnp.float32)
    mask = mask.at[0, 0].set(1.0)  # ensure mask.sum() > 0

    # exercise smoothed / non-smoothed paths and the bf16 (low-HBM) logits path
    cases = [
        (logits, 0.1, 1.0, 1e-4),
        (logits, 0.0, 2.0, 1e-4),
        (logits.astype(jnp.bfloat16), 0.1, 1.0, 2e-4),
    ]
    for lg, label_smoothing, scale_factor, tol in cases:
        loss = masked_kl_divergence(
            lg, ori_labels, mask,
            num_classes=NUM_CLASSES,
            scale_factor=scale_factor,
            label_smoothing=label_smoothing,
        )
        loss = jax.block_until_ready(loss)

        ref = _reference(lg, ori_labels, mask,
                         num_classes=NUM_CLASSES,
                         scale_factor=scale_factor,
                         label_smoothing=label_smoothing)
        ref = jax.block_until_ready(ref)

        assert jnp.allclose(loss, ref, rtol=tol, atol=tol), \
            (label_smoothing, scale_factor, loss, ref)

    # mask=None path
    loss = masked_kl_divergence(logits, ori_labels, None,
                                num_classes=NUM_CLASSES,
                                scale_factor=1.0, label_smoothing=0.1)
    loss = jax.block_until_ready(loss)
    ref = _reference(logits, ori_labels, jnp.ones((B, T), jnp.float32),
                     num_classes=NUM_CLASSES, scale_factor=1.0, label_smoothing=0.1)
    assert jnp.allclose(loss, ref, rtol=1e-4, atol=1e-4), (loss, ref)

    print("KERNEL_OK")
</pallas_src>

<mosaic_0001>
module attributes {stable_mosaic.version = 11 : i64} {
  func.func @_masked_kl_kernel(%arg0: i32, %arg1: i32, %arg2: memref<16x1025xf32, #tpu.memory_space<vmem>>, %arg3: memref<16x1xf32, #tpu.memory_space<vmem>>, %arg4: memref<16x1xf32, #tpu.memory_space<vmem>>, %arg5: memref<16x1xf32, #tpu.memory_space<vmem>>, %arg6: memref<16x1xf32, #tpu.memory_space<vmem>>) attributes {dimension_semantics = [#tpu.dimension_semantics<arbitrary>, #tpu.dimension_semantics<arbitrary>], iteration_bounds = array<i64: 1, 1>, scalar_prefetch = 0 : i64, scratch_operands = 0 : i64, tpu.core_type = #tpu.core_type<tc>, window_params = [{transform_indices = @transform_0, window_bounds = array<i64: 16, 1025>}, {transform_indices = @transform_1, window_bounds = array<i64: 16, 1>}, {transform_indices = @transform_2, window_bounds = array<i64: 16, 1>}, {transform_indices = @transform_3, window_bounds = array<i64: 16, 1>}, {transform_indices = @transform_4, window_bounds = array<i64: 16, 1>}]} {
    %c0_i32 = arith.constant 0 : i32
    %0 = arith.cmpi eq, %arg1, %c0_i32 : i32
    %1 = arith.extui %0 : i1 to i32
    %c0_i32_0 = arith.constant 0 : i32
    %2 = arith.cmpi ne, %1, %c0_i32_0 : i32
    scf.if %2 {
      %cst_24 = arith.constant 0.000000e+00 : f32
      %39 = vector.broadcast %cst_24 : f32 to vector<16x1xf32>
      %c0_25 = arith.constant 0 : index
      %c0_26 = arith.constant 0 : index
      %40 = vector.load %arg5[%c0_25, %c0_26] : memref<16x1xf32, #tpu.memory_space<vmem>>, vector<16x1xf32>
      tpu.vector_store %arg5[%c0_25, %c0_26], %39 {strides = array<i32>} : memref<16x1xf32, #tpu.memory_space<vmem>>, vector<16x1xf32>,
      %cst_27 = arith.constant 0.000000e+00 : f32
      %41 = vector.broadcast %cst_27 : f32 to vector<16x1xf32>
      %c0_28 = arith.constant 0 : index
      %c0_29 = arith.constant 0 : index
      %42 = vector.load %arg6[%c0_28, %c0_29] : memref<16x1xf32, #tpu.memory_space<vmem>>, vector<16x1xf32>
      tpu.vector_store %arg6[%c0_28, %c0_29], %41 {strides = array<i32>} : memref<16x1xf32, #tpu.memory_space<vmem>>, vector<16x1xf32>,
    } else {
    }
    %c0 = arith.constant 0 : index
    %c0_1 = arith.constant 0 : index
    %3 = vector.load %arg2[%c0, %c0_1] : memref<16x1025xf32, #tpu.memory_space<vmem>>, vector<16x1025xf32>
    %cst = arith.constant dense<0xFF800000> : vector<16xf32>
    %4 = vector.multi_reduction <maximumf>, %3, %cst [1] : vector<16x1025xf32> to vector<16xf32>
    %5 = vector.shape_cast %4 : vector<16xf32> to vector<16x1xf32>
    %6 = vector.broadcast %5 : vector<16x1xf32> to vector<16x1025xf32>
    %7 = arith.subf %3, %6 : vector<16x1025xf32>
    %8 = math.exp %7 : vector<16x1025xf32>
    %cst_2 = arith.constant 1.000000e+00 : f32
    %9 = vector.broadcast %cst_2 : f32 to vector<1025x1xf32>
    %cst_3 = arith.constant dense<0.000000e+00> : vector<16x1xf32>
    %10 = tpu.matmul %8, %9, %cst_3 {dimension_numbers = #tpu.dot_dimension_numbers<[1], [0], [0], [1], [0, 0, 1, 1], [], []>} : vector<16x1025xf32>, vector<1025x1xf32>, vector<16x1xf32> -> vector<16x1xf32>
    %11 = math.log %10 : vector<16x1xf32>
    %c0_4 = arith.constant 0 : index
    %c0_5 = arith.constant 0 : index
    %12 = vector.load %arg3[%c0_4, %c0_5] : memref<16x1xf32, #tpu.memory_space<vmem>>, vector<16x1xf32>
    %13 = arith.subf %12, %5 : vector<16x1xf32>
    %14 = arith.subf %13, %11 : vector<16x1xf32>
    %cst_6 = arith.constant 0.899902343 : f32
    %15 = vector.broadcast %cst_6 : f32 to vector<16x1xf32>
    %16 = arith.mulf %15, %14 : vector<16x1xf32>
    %cst_7 = arith.constant dense<0.000000e+00> : vector<16x1xf32>
    %17 = tpu.matmul %7, %9, %cst_7 {dimension_numbers = #tpu.dot_dimension_numbers<[1], [0], [0], [1], [0, 0, 1, 1], [], []>} : vector<16x1025xf32>, vector<1025x1xf32>, vector<16x1xf32> -> vector<16x1xf32>
    %cst_8 = arith.constant 1.025000e+03 : f32
    %18 = vector.broadcast %cst_8 : f32 to vector<16x1xf32>
    %19 = arith.mulf %18, %11 : vector<16x1xf32>
    %20 = arith.subf %17, %19 : vector<16x1xf32>
    %cst_9 = arith.constant 9.76562514E-5 : f32
    %21 = vector.broadcast %cst_9 : f32 to vector<16x1xf32>
    %22 = arith.mulf %21, %20 : vector<16x1xf32>
    %23 = arith.addf %16, %22 : vector<16x1xf32>
    %cst_10 = arith.constant 0.000000e+00 : f32
    %24 = vector.broadcast %cst_10 : f32 to vector<16x1xf32>
    %25 = arith.subf %24, %23 : vector<16x1xf32>
    %cst_11 = arith.constant -1.0182302 : f32
    %26 = vector.broadcast %cst_11 : f32 to vector<16x1xf32>
    %27 = arith.addf %26, %25 : vector<16x1xf32>
    %c0_12 = arith.constant 0 : index
    %c0_13 = arith.constant 0 : index
    %28 = vector.load %arg4[%c0_12, %c0_13] : memref<16x1xf32, #tpu.memory_space<vmem>>, vector<16x1xf32>
    %c0_14 = arith.constant 0 : index
    %c0_15 = arith.constant 0 : index
    %29 = vector.load %arg5[%c0_14, %c0_15] : memref<16x1xf32, #tpu.memory_space<vmem>>, vector<16x1xf32>
    %cst_16 = arith.constant 0.000000e+00 : f32
    %30 = vector.broadcast %cst_16 : f32 to vector<16x1xf32>
    %31 = arith.cmpf one, %28, %30 : vector<16x1xf32>
    %cst_17 = arith.constant 0.000000e+00 : f32
    %32 = vector.broadcast %cst_17 : f32 to vector<16x1xf32>
    %33 = arith.select %31, %27, %32 : vector<16x1xi1>, vector<16x1xf32>
    %34 = arith.addf %29, %33 : vector<16x1xf32>
    %c0_18 = arith.constant 0 : index
    %c0_19 = arith.constant 0 : index
    %35 = vector.load %arg5[%c0_18, %c0_19] : memref<16x1xf32, #tpu.memory_space<vmem>>, vector<16x1xf32>
    tpu.vector_store %arg5[%c0_18, %c0_19], %34 {strides = array<i32>} : memref<16x1xf32, #tpu.memory_space<vmem>>, vector<16x1xf32>,
    %c0_20 = arith.constant 0 : index
    %c0_21 = arith.constant 0 : index
    %36 = vector.load %arg6[%c0_20, %c0_21] : memref<16x1xf32, #tpu.memory_space<vmem>>, vector<16x1xf32>
    %37 = arith.addf %36, %28 : vector<16x1xf32>
    %c0_22 = arith.constant 0 : index
    %c0_23 = arith.constant 0 : index
    %38 = vector.load %arg6[%c0_22, %c0_23] : memref<16x1xf32, #tpu.memory_space<vmem>>, vector<16x1xf32>
    tpu.vector_store %arg6[%c0_22, %c0_23], %37 {strides = array<i32>} : memref<16x1xf32, #tpu.memory_space<vmem>>, vector<16x1xf32>,
    return
  }
  func.func @transform_0(%arg0: i32, %arg1: i32) -> (i32, i32) {
    %c1_i32 = arith.constant 1 : i32
    %0 = arith.muli %arg0, %c1_i32 : i32
    %1 = arith.addi %0, %arg1 : i32
    %c0_i32 = arith.constant 0 : i32
    %c0_i32_0 = arith.constant 0 : i32
    return %1, %c0_i32 : i32, i32
  }
  func.func @transform_1(%arg0: i32, %arg1: i32) -> (i32, i32) {
    %c1_i32 = arith.constant 1 : i32
    %0 = arith.muli %arg0, %c1_i32 : i32
    %1 = arith.addi %0, %arg1 : i32
    %c0_i32 = arith.constant 0 : i32
    %c0_i32_0 = arith.constant 0 : i32
    return %1, %c0_i32 : i32, i32
  }
  func.func @transform_2(%arg0: i32, %arg1: i32) -> (i32, i32) {
    %c1_i32 = arith.constant 1 : i32
    %0 = arith.muli %arg0, %c1_i32 : i32
    %1 = arith.addi %0, %arg1 : i32
    %c0_i32 = arith.constant 0 : i32
    %c0_i32_0 = arith.constant 0 : i32
    return %1, %c0_i32 : i32, i32
  }
  func.func @transform_3(%arg0: i32, %arg1: i32) -> (i32, i32) {
    %c0_i32 = arith.constant 0 : i32
    %c0_i32_0 = arith.constant 0 : i32
    return %arg0, %c0_i32 : i32, i32
  }
  func.func @transform_4(%arg0: i32, %arg1: i32) -> (i32, i32) {
    %c0_i32 = arith.constant 0 : i32
    %c0_i32_0 = arith.constant 0 : i32
    return %arg0, %c0_i32 : i32, i32
  }
}

</mosaic_0001>

<bundles_post_ra>
// kernel: tpu_custom_call.1
= control target key start
LH: loop header
LB: loop body
LE: loop exit
PB: predicated region body
PF: predicated region fallthrough
CT: control target
= control target key end

     0   :  { %10 = vsyncpa [#allocation3], 0  ;;  %s1538_s15 = smov [#allocation2]   ;;  %s1935_s0 = inlined_call_operand.hbm [shape: f32[16,1025], index: 0, kind: input, shape index: {}]   ;;  %s1936_s1 = inlined_call_operand.vmem [shape: f32[16,1], index: 1, kind: input, shape index: {}]   ;;  %s1937_s2 = inlined_call_operand.vmem [shape: f32[16,1], index: 2, kind: input, shape index: {}]   ;;  %s1938_s3 = inlined_call_operand.vmem [shape: f32[16,1], index: 3, kind: output, shape index: {0}]   ;;  %s1939_s4 = inlined_call_operand.vmem [shape: f32[16,1], index: 4, kind: output, shape index: {1}]  }
   0x1   :  { %s21_s16 = sshll.u32 %s1538_s15, 4  ;;  %s1514_s19 = scalar_lea.hbm %s1935_s0, 2304  ;;  %s22_s16 = int_to_ptr.vmem [resolvable:$true] %s21_s16 }
   0x2   :  { %p1515_p0 = scmp.ne.s32.totalorder %s1935_s0, %s1514_s19  ;;  %p1518_p1 = scmp.lt.u32.totalorder %s1514_s19, %s1935_s0 }
   0x4   :  { %p1520_p2 = pnand %p1518_p1, %p1515_p0 }
   0x6   :  { %1523 = shalt.err (!%p1520_p2)
}
   0x7   :  { %s1524_s24 = scalar_lea.vmem %s22_s16, 2304  ;;  %p1529_p4 = scmp.lt.s32.totalorder %s22_s16, %s22_s16 }
   0x8   :  { %p1525_p3 = scmp.ne.s32.totalorder %s22_s16, %s1524_s24  ;;  %p1530_p5 = scmp.lt.s32.totalorder %s1524_s24, %s1524_s24 }
   0xa   :  { %p1531_p6 = por %p1530_p5, %p1529_p4 }
   0xc   :  { %p1532_p7 = pnand %p1531_p6, %p1525_p3 }
   0xe   :  { %1535 = shalt.err (!%p1532_p7)
}
   0xf   :  { %s1539_s25 = smov 1152   ;;  %s1540_s26 = smov 72  }
  0x10   :  { %27 = dma.hbm_to_vmem [thread:$0]  %s1935_s0, 2304, %s22_s16, [#allocation3], %s1539_s25, %s1539_s25, %s1540_s26  }
  0x11   :  { %1536 = dma.done.wait [#allocation3], 2304  }
  0x12   :  { %1537 = vsyncadd [#allocation3], 4294964992  ;;  %v1541_v0 = vmov 1.0|1.0   ;;  %v1589_v1 = vld [vmem:[#allocation2] sm:$0xff]  ;;  %v1591_v2 = vld [vmem:[#allocation2 + $0x8] sm:$0xff] }
  0x13   :  { %1340 = vmatprep.subr.bf16.mxu0 %v1541_v0  ;;  %1356 = vmatprep.subr.bf16.mxu1 %v1541_v0  ;;  %v1593_v3 = vld [vmem:[#allocation2 + $0x10] sm:$0xff]  ;;  %vm85_vm0 = vcmask 7168   ;;  %v93_v4 = vld [vmem:[#allocation2 + $0x18] sm:$0xff]  ;;  %v1597_v5 = vld [vmem:[#allocation2 + $0x20] sm:$0xff]  ;;  %vm191_vm1 = vcmask 1040384  }
  0x14   :  { %1341 = vmatpush3.bf16.msra.mxu0 %v1541_v0  ;;  %1357 = vmatpush3.bf16.msra.mxu1 %v1541_v0  ;;  %v1599_v6 = vld [vmem:[#allocation2 + $0x28] sm:$0xff]  ;;  %v108_v7 = vmax.f32 %v1589_v1, %v1593_v3  ;;  %v1603_v8 = vld [vmem:[#allocation2 + $0x30] sm:$0xff]  ;;  %v1605_v9 = vld [vmem:[#allocation2 + $0x38] sm:$0xff]  ;;  %v109_v11 = vmax.f32 %v1591_v2, %v93_v4 }
  0x15   :  { %1342 = vmatprep.subr.bf16.mxu0 %v1541_v0  ;;  %1358 = vmatprep.subr.bf16.mxu1 %v1541_v0  ;;  %v1607_v10 = vld [vmem:[#allocation2 + $0x40] sm:$0xff]  ;;  %v99_v13 = vld [vmem:[#allocation2 + $0x48] sm:$0xff]  ;;  %v100_v14 = vld [vmem:[#allocation2 + $0x50] sm:$0xff] }
  0x16   :  { %v110_v12 = vmax.f32 %v108_v7, %v1597_v5  ;;  %v101_v15 = vld [vmem:[#allocation2 + $0x58] sm:$0xff]  ;;  %v111_v16 = vmax.f32 %v109_v11, %v1599_v6  ;;  %v115_v17 = vsel %vm85_vm0, %v1607_v10, -inf  ;;  %v102_v18 = vld [vmem:[#allocation2 + $0x60] sm:$0xff]  ;;  %v1616_v19 = vld [vmem:[#allocation2 + $0x68] sm:$0xff] }
  0x17   :  { %v1618_v20 = vld [vmem:[#allocation2 + $0x70] sm:$0xff]  ;;  %v120_v21 = vmax.f32 %v99_v13, %v101_v15  ;;  %v1623_v23 = vld [vmem:[#allocation2 + $0x78] sm:$0xff]  ;;  %v1625_v24 = vld [vmem:[#allocation2 + $0x88] sm:$0xff]  ;;  %v121_v25 = vmax.f32 %v100_v14, %v102_v18 }
  0x18   :  { %1343 = vmatpush3.bf16.msra.mxu0 %v1541_v0  ;;  %1359 = vmatpush3.bf16.msra.mxu1 %v1541_v0  ;;  %v112_v22 = vmax.f32 %v110_v12, %v1603_v8  ;;  %v113_v26 = vmax.f32 %v111_v16, %v1605_v9  ;;  %v1628_v27 = vld [vmem:[#allocation2 + $0x80] sm:$0xff]  ;;  %v126_v31 = vsel %vm85_vm0, %v1625_v24, -inf }
  0x19   :  { %1344 = vmatprep.subr.bf16.mxu0 %v1541_v0  ;;  %1360 = vmatprep.subr.bf16.mxu1 %v1541_v0  ;;  %v122_v28 = vmax.f32 %v120_v21, %v1616_v19  ;;  %v123_v30 = vmax.f32 %v121_v25, %v1618_v20 }
  0x1a   :  { %v116_v29 = vmax.f32 %v112_v22, %v115_v17 }
  0x1b   :  { %v124_v32 = vmax.f32 %v122_v28, %v1623_v23  ;;  %v125_v34 = vmax.f32 %v123_v30, %v1628_v27 }
  0x1c   :  { %1345 = vmatpush3.bf16.msra.mxu0 %v1541_v0  ;;  %1361 = vmatpush3.bf16.msra.mxu1 %v1541_v0  ;;  %v117_v33 = vmax.f32 %v116_v29, %v113_v26 }
  0x1d   :  { %1346 = vmatprep.subr.bf16.mxu0 %v1541_v0  ;;  %1362 = vmatprep.subr.bf16.mxu1 %v1541_v0  ;;  %v127_v35 = vmax.f32 %v124_v32, %v126_v31  ;;  %v1543_v31 = vmov 0.0  }
  0x1e   :  { %118 = vmax.xlane.f32.xlu0 %v117_v33  ;;  %86 = vst.msk [vmem:[%s1938_s3] sm:$0xff] %vm85_vm0, %v1543_v31  ;;  %88 = vst.msk [vmem:[%s1939_s4] sm:$0xff] %vm85_vm0, %v1543_v31 }
  0x1f   :  { %v128_v36 = vmax.f32 %v127_v35, %v125_v34  ;;  %87 = vst.msk [vmem:[%s1938_s3 + $0x8] sm:$0xff] %vm85_vm0, %v1543_v31  ;;  %89 = vst.msk [vmem:[%s1939_s4 + $0x8] sm:$0xff] %vm85_vm0, %v1543_v31 }
  0x20   :  { %1347 = vmatpush3.bf16.msra.mxu0 %v1541_v0  ;;  %1363 = vmatpush3.bf16.msra.mxu1 %v1541_v0 }
  0x21   :  { %1348 = vmatprep.subr.bf16.mxu0 %v1541_v0  ;;  %1364 = vmatprep.subr.bf16.mxu1 %v1541_v0 }
  0x22   :  { %129 = vmax.xlane.f32.xlu0 %v128_v36 }
  0x24   :  { %1349 = vmatpush3.bf16.msra.mxu0 %v1541_v0  ;;  %1365 = vmatpush3.bf16.msra.mxu1 %v1541_v0 }
  0x25   :  { %1350 = vmatprep.subr.bf16.mxu0 %v1541_v0  ;;  %1366 = vmatprep.subr.bf16.mxu1 %v1541_v0  ;;  %v987_v32 = vld [vmem:[%s1939_s4] sm:$0xff] }
  0x28   :  { %1351 = vmatpush3.bf16.msra.mxu0 %v1541_v0  ;;  %1367 = vmatpush3.bf16.msra.mxu1 %v1541_v0 }
  0x29   :  { %1352 = vmatprep.subr.bf16.mxu0 %v1541_v0  ;;  %1368 = vmatprep.subr.bf16.mxu1 %v1541_v0 }
  0x2c   :  { %1353 = vmatpush3.bf16.msra.mxu0 %v1541_v0  ;;  %1369 = vmatpush3.bf16.msra.mxu1 %v1541_v0 }
  0x2d   :  { %1354 = vmatprep.subr.bf16.mxu0 %v1541_v0  ;;  %1370 = vmatprep.subr.bf16.mxu1 %v1541_v0 }
  0x30   :  { %1355 = vmatpush3.bf16.msra.mxu0 %v1541_v0  ;;  %1371 = vmatpush3.bf16.msra.mxu1 %v1541_v0 }
  0x31   :  { %1372 = vmatprep.subr.bf16.mxu0 %v1541_v0  ;;  %1388 = vmatprep.subr.bf16.mxu1 %v1541_v0 }
  0xab   :  { %v1656_v37 = vpop.xlane.xlu0 %118 }
  0xac   :  { %v1660_v38 = vsub.f32 %v1591_v2, %v1656_v37  ;;  %v1663_v39 = vsub.f32 %v93_v4, %v1656_v37  ;;  %v1667_v40 = vsub.f32 %v1589_v1, %v1656_v37  ;;  %v1674_v43 = vsub.f32 %v1593_v3, %v1656_v37 }
  0xad   :  { %v1694_v52 = vsub.f32 %v1599_v6, %v1656_v37  ;;  %v1699_v54 = vsub.f32 %v1605_v9, %v1656_v37  ;;  %v1719_v7 = vsub.f32 %v1597_v5, %v1656_v37  ;;  %v1723_v9 = vsub.f32 %v1603_v8, %v1656_v37 }
  0xae   :  { %v151_v42 = vmul.f32 1.442695, %v1660_v38  ;;  %v155_v45 = vmul.f32 1.442695, %v1663_v39  ;;  %v149_v47 = vmul.f32 1.442695, %v1667_v40  ;;  %v1739_v5 = vsub.f32 %v1607_v10, %v1656_v37 }
  0xaf   :  { %v1669_v41 = vpop.xlane.xlu0 %129  ;;  %v153_v50 = vmul.f32 1.442695, %v1674_v43  ;;  %v159_v57 = vmul.f32 1.442695, %v1694_v52  ;;  %v163_v58 = vmul.f32 1.442695, %v1699_v54 }
  0xb0   :  { %v1677_v44 = vsub.f32 %v100_v14, %v1669_v41  ;;  %v1681_v46 = vsub.f32 %v102_v18, %v1669_v41  ;;  %v1685_v48 = vsub.f32 %v99_v13, %v1669_v41  ;;  %v1688_v49 = vsub.f32 %v101_v15, %v1669_v41 }
  0xb1   :  { %1474 = vpow2.f32 %v151_v42  ;;  %v1728_v11 = vsub.f32 %v1618_v20, %v1669_v41  ;;  %v1734_v12 = vsub.f32 %v1628_v27, %v1669_v41  ;;  %v157_v8 = vmul.f32 1.442695, %v1719_v7 }
  0xb2   :  { %1476 = vpow2.f32 %v155_v45  ;;  %v169_v51 = vmul.f32 1.442695, %v1677_v44  ;;  %v173_v53 = vmul.f32 1.442695, %v1681_v46  ;;  %v167_v55 = vmul.f32 1.442695, %v1685_v48 }
  0xb3   :  { %1478 = vpow2.f32 %v149_v47  ;;  %v171_v56 = vmul.f32 1.442695, %v1688_v49  ;;  %v161_v13 = vmul.f32 1.442695, %v1723_v9  ;;  %v1745_v14 = vsub.f32 %v1616_v19, %v1669_v41 }
  0xb4   :  { %1480 = vpow2.f32 %v153_v50  ;;  %v1750_v15 = vsub.f32 %v1623_v23, %v1669_v41  ;;  %v177_v10 = vmul.f32 1.442695, %v1728_v11  ;;  %v181_v16 = vmul.f32 1.442695, %v1734_v12 }
  0xb5   :  { %1482 = vpow2.f32 %v169_v51  ;;  %v165_v17 = vmul.f32 1.442695, %v1739_v5  ;;  %v1760_v18 = vsub.f32 %v1625_v24, %v1669_v41  ;;  %v175_v19 = vmul.f32 1.442695, %v1745_v14 }
  0xb6   :  { %1484 = vpow2.f32 %v173_v53  ;;  %v179_v20 = vmul.f32 1.442695, %v1750_v15  ;;  %v1542_v23 = vmov 1.0  }
  0xb7   :  { %1486 = vpow2.f32 %v167_v55  ;;  %v183_v21 = vmul.f32 1.442695, %v1760_v18 }
  0xb8   :  { %1488 = vpow2.f32 %v171_v56 }
  0xb9   :  { %1490 = vpow2.f32 %v159_v57 }
  0xba   :  { %1492 = vpow2.f32 %v163_v58 }
  0xbb   :  { %v1475_v59 = vpop.eup %1474  ;;  %1494 = vpow2.f32 %v157_v8 }
  0xbc   :  { %v1477_v60 = vpop.eup %1476  ;;  %259 = vmatprep.mubr.f32.mxu0 %v1475_v59  ;;  %1496 = vpow2.f32 %v161_v13  ;;  %v575_v13 = vld [vmem:[%s1936_s1 + $0x8] sm:$0xff] }
  0xbd   :  { %v1479_v61 = vpop.eup %1478  ;;  %334 = vmatprep.mubr.f32.mxu1 %v1477_v60  ;;  %1498 = vpow2.f32 %v177_v10 }
  0xbe   :  { %260 = vmatmul.mubr.f32.vlgmr.msra.gmra.mrb[0].mxu0 %v1479_v61  ;;  %v1481_v62 = vpop.eup %1480  ;;  %1500 = vpow2.f32 %v181_v16 }
  0xbf   :  { %1373 = vmatpush3.bf16.msra.mxu0 %v1541_v0  ;;  %v1483_v63 = vpop.eup %1482  ;;  %335 = vmatmul.mubr.f32.vlgmr.msra.gmra.mrb[0].mxu1 %v1481_v62  ;;  %1502 = vpow2.f32 %v165_v17  ;;  %v577_v17 = vsub.f32 %v575_v13, %v1669_v41 }
  0xc0   :  { %1374 = vmatprep.subr.bf16.mxu0 %v1541_v0  ;;  %v1485_v1 = vpop.eup %1484  ;;  %1389 = vmatpush3.bf16.msra.mxu1 %v1541_v0  ;;  %1504 = vpow2.f32 %v175_v19 }
  0xc1   :  { %264 = vmatprep.mubr.f32.mxu0 %v1483_v63  ;;  %v1487_v2 = vpop.eup %1486  ;;  %339 = vmatprep.mubr.f32.mxu1 %v1485_v1  ;;  %1506 = vpow2.f32 %v179_v20 }
  0xc2   :  { %1390 = vmatprep.subr.bf16.mxu1 %v1541_v0  ;;  %v1489_v3 = vpop.eup %1488  ;;  %265 = vmatmul.mubr.f32.gmra.mrb[2].mxu0 %v1487_v2  ;;  %1508 = vpow2.f32 %v183_v21 }
  0xc3   :  { %v1491_v4 = vpop.eup %1490  ;;  %340 = vmatmul.mubr.f32.gmra.mrb[2].mxu1 %v1489_v3  ;;  %1375 = vmatpush3.bf16.msra.mxu0 %v1541_v0 }
  0xc4   :  { %v1493_v6 = vpop.eup %1492  ;;  %1391 = vmatpush3.bf16.msra.mxu1 %v1541_v0  ;;  %409 = vmatprep.mubr.f32.mxu0 %v1491_v4 }
  0xc5   :  { %484 = vmatprep.mubr.f32.mxu1 %v1493_v6  ;;  %1376 = vmatprep.subr.bf16.mxu0 %v1541_v0  ;;  %v1495_v22 = vpop.eup %1494 }
  0xc6   :  { %1392 = vmatprep.subr.bf16.mxu1 %v1541_v0  ;;  %v1497_v24 = vpop.eup %1496 }
  0xc7   :  { %1377 = vmatpush3.bf16.msra.mxu0 %v1541_v0  ;;  %v1499_v25 = vpop.eup %1498 }
  0xc8   :  { %1393 = vmatpush3.bf16.msra.mxu1 %v1541_v0  ;;  %1378 = vmatprep.subr.bf16.mxu0 %v1541_v0  ;;  %v1501_v26 = vpop.eup %1500 }
  0xc9   :  { %1394 = vmatprep.subr.bf16.mxu1 %v1541_v0  ;;  %v1503_v27 = vpop.eup %1502 }
  0xca   :  { %v1505_v28 = vpop.eup %1504 }
  0xcb   :  { %1379 = vmatpush3.bf16.msra.mxu0 %v1541_v0  ;;  %v1507_v29 = vpop.eup %1506 }
  0xcc   :  { %1395 = vmatpush3.bf16.msra.mxu1 %v1541_v0  ;;  %1380 = vmatprep.subr.bf16.mxu0 %v1541_v0  ;;  %v1509_v30 = vpop.eup %1508 }
  0xcd   :  { %1396 = vmatprep.subr.bf16.mxu1 %v1541_v0 }
  0xcf   :  { %1381 = vmatpush3.bf16.msra.mxu0 %v1541_v0 }
  0xd0   :  { %1397 = vmatpush3.bf16.msra.mxu1 %v1541_v0  ;;  %1382 = vmatprep.subr.bf16.mxu0 %v1541_v0 }
  0xd1   :  { %1398 = vmatprep.subr.bf16.mxu1 %v1541_v0 }
  0xd3   :  { %1383 = vmatpush3.bf16.msra.mxu0 %v1541_v0 }
  0xd4   :  { %1399 = vmatpush3.bf16.msra.mxu1 %v1541_v0  ;;  %1384 = vmatprep.subr.bf16.mxu0 %v1541_v0 }
  0xd5   :  { %1400 = vmatprep.subr.bf16.mxu1 %v1541_v0 }
  0xd7   :  { %1385 = vmatpush3.bf16.msra.mxu0 %v1541_v0 }
  0xd8   :  { %1401 = vmatpush3.bf16.msra.mxu1 %v1541_v0  ;;  %1386 = vmatprep.subr.bf16.mxu0 %v1541_v0 }
  0xd9   :  { %1402 = vmatprep.subr.bf16.mxu1 %v1541_v0 }
  0xdb   :  { %1387 = vmatpush3.bf16.msra.mxu0 %v1541_v0 }
  0xdc   :  { %1403 = vmatpush3.bf16.msra.mxu1 %v1541_v0  ;;  %1330 = vmatprep.subr.msk.mxu0 %vm191_vm1, %v1542_v23 }
  0xdd   :  { %1404 = vmatprep.subr.bf16.mxu1 %v1541_v0 }
  0xde   :  { %410 = vmatmul.mubr.f32.vlgmr.msra.gmra.mrb[4].mxu0 %v1495_v22 }
  0xdf   :  { %485 = vmatmul.mubr.f32.vlgmr.msra.gmra.mrb[4].mxu1 %v1497_v24  ;;  %414 = vmatprep.mubr.f32.mxu0 %v1499_v25 }
  0xe0   :  { %489 = vmatprep.mubr.f32.mxu1 %v1501_v26  ;;  %1331 = vmatpush3.msk.msra.mxu0 %vm191_vm1, %v1542_v23 }
  0xe1   :  { %1405 = vmatpush3.bf16.msra.mxu1 %v1541_v0  ;;  %1420 = vmatprep.subr.bf16.mxu0 %v1541_v0 }
  0xe2   :  { %415 = vmatmul.mubr.f32.gmra.mrb[6].mxu0 %v1505_v28  ;;  %1406 = vmatprep.subr.bf16.mxu1 %v1541_v0 }
  0xe3   :  { %490 = vmatmul.mubr.f32.gmra.mrb[6].mxu1 %v1507_v29  ;;  %1332 = vmatprep.mubr.msk.f32.mxu0 %vm85_vm0, %v1503_v27 }
  0xe4   :  { %652 = vmatprep.mubr.f32.mxu1 %v1660_v38 }
  0xe5   :  { %1407 = vmatpush3.bf16.msra.mxu1 %v1541_v0 }
  0xe6   :  { %1333 = vmatmul.mubr.msk.f32.vlgmr.msra.gmra.mrb[8].mxu0 %vm85_vm0, %v1509_v30  ;;  %1408 = vmatprep.subr.bf16.mxu1 %v1541_v0 }
  0xe7   :  { %1421 = vmatpush3.bf16.msra.mxu0 %v1541_v0  ;;  %727 = vmatprep.mubr.f32.mxu0 %v1663_v39  ;;  %v1901_v39 = vld [vmem:[%s1937_s2 + $0x8] sm:$0xff] }
  0xe8   :  { %1422 = vmatprep.subr.bf16.mxu0 %v1541_v0  ;;  %vm980_vm3 = vcmp.ne.f32.partialorder %v1901_v39, 0.0 }
  0xe9   :  { %1409 = vmatpush3.bf16.msra.mxu1 %v1541_v0 }
  0xea   :  { %1410 = vmatprep.subr.bf16.mxu1 %v1541_v0 }
  0xeb   :  { %1423 = vmatpush3.bf16.msra.mxu0 %v1541_v0 }
  0xec   :  { %1424 = vmatprep.subr.bf16.mxu0 %v1541_v0 }
  0xed   :  { %1411 = vmatpush3.bf16.msra.mxu1 %v1541_v0 }
  0xee   :  { %1412 = vmatprep.subr.bf16.mxu1 %v1541_v0 }
  0xef   :  { %1425 = vmatpush3.bf16.msra.mxu0 %v1541_v0 }
  0xf0   :  { %1426 = vmatprep.subr.bf16.mxu0 %v1541_v0 }
  0xf1   :  { %1413 = vmatpush3.bf16.msra.mxu1 %v1541_v0 }
  0xf2   :  { %1414 = vmatprep.subr.bf16.mxu1 %v1541_v0 }
  0xf3   :  { %1427 = vmatpush3.bf16.msra.mxu0 %v1541_v0 }
  0xf4   :  { %1428 = vmatprep.subr.bf16.mxu0 %v1541_v0 }
  0xf5   :  { %1415 = vmatpush3.bf16.msra.mxu1 %v1541_v0 }
  0xf6   :  { %1416 = vmatprep.subr.bf16.mxu1 %v1541_v0 }
  0xf7   :  { %1429 = vmatpush3.bf16.msra.mxu0 %v1541_v0 }
  0xf8   :  { %1430 = vmatprep.subr.bf16.mxu0 %v1541_v0 }
  0xf9   :  { %1417 = vmatpush3.bf16.msra.mxu1 %v1541_v0 }
  0xfa   :  { %1418 = vmatprep.subr.bf16.mxu1 %v1541_v0 }
  0xfb   :  { %1431 = vmatpush3.bf16.msra.mxu0 %v1541_v0 }
  0xfc   :  { %1432 = vmatprep.subr.bf16.mxu0 %v1541_v0 }
  0xfd   :  { %1419 = vmatpush3.bf16.msra.mxu1 %v1541_v0 }
  0xfe   :  { %1436 = vmatprep.subr.bf16.mxu1 %v1541_v0 }
  0xff   :  { %1433 = vmatpush3.bf16.msra.mxu0 %v1541_v0 }
 0x100   :  { %653 = vmatmul.mubr.f32.vlgmr.msra.gmra.mrb[8].mxu1 %v1667_v40  ;;  %1434 = vmatprep.subr.bf16.mxu0 %v1541_v0  ;;  %v988_v40 = vld [vmem:[%s1939_s4 + $0x8] sm:$0xff] }
 0x101   :  { %657 = vmatprep.mubr.f32.mxu1 %v1677_v44  ;;  %1437 = vmatpush3.bf16.msra.mxu1 %v1541_v0 }
 0x102   :  { %1438 = vmatprep.subr.bf16.mxu1 %v1541_v0 }
 0x103   :  { %1435 = vmatpush3.bf16.msra.mxu0 %v1541_v0 }
 0x104   :  { %658 = vmatmul.mubr.f32.gmra.mrb[10].mxu1 %v1685_v48  ;;  %1452 = vmatprep.subr.bf16.mxu0 %v1541_v0 }
 0x105   :  { %1439 = vmatpush3.bf16.msra.mxu1 %v1541_v0  ;;  %802 = vmatprep.mubr.f32.mxu1 %v1694_v52 }
 0x106   :  { %728 = vmatmul.mubr.f32.vlgmr.msra.gmra.mrb[10].mxu0 %v1674_v43  ;;  %1440 = vmatprep.subr.bf16.mxu1 %v1541_v0  ;;  %v990_v43 = vadd.f32 %v988_v40, %v1901_v39 }
 0x107   :  { %732 = vmatprep.mubr.f32.mxu0 %v1681_v46  ;;  %1453 = vmatpush3.bf16.msra.mxu0 %v1541_v0 }
 0x108   :  { %1454 = vmatprep.subr.bf16.mxu0 %v1541_v0  ;;  %992 = vst.msk [vmem:[%s1939_s4 + $0x8] sm:$0xff] %vm85_vm0, %v990_v43 }
 0x109   :  { %1441 = vmatpush3.bf16.msra.mxu1 %v1541_v0 }
 0x10a   :  { %733 = vmatmul.mubr.f32.gmra.mrb[12].mxu0 %v1688_v49  ;;  %1442 = vmatprep.subr.bf16.mxu1 %v1541_v0 }
 0x10b   :  { %1455 = vmatpush3.bf16.msra.mxu0 %v1541_v0  ;;  %877 = vmatprep.mubr.f32.mxu0 %v1699_v54 }
 0x10c   :  { %1456 = vmatprep.subr.bf16.mxu0 %v1541_v0 }
 0x10d   :  { %1443 = vmatpush3.bf16.msra.mxu1 %v1541_v0 }
 0x10e   :  { %1444 = vmatprep.subr.bf16.mxu1 %v1541_v0 }
 0x10f   :  { %1457 = vmatpush3.bf16.msra.mxu0 %v1541_v0 }
 0x110   :  { %1458 = vmatprep.subr.bf16.mxu0 %v1541_v0 }
 0x111   :  { %1445 = vmatpush3.bf16.msra.mxu1 %v1541_v0 }
 0x112   :  { %1446 = vmatprep.subr.bf16.mxu1 %v1541_v0 }
 0x113   :  { %1459 = vmatpush3.bf16.msra.mxu0 %v1541_v0 }
 0x114   :  { %1460 = vmatprep.subr.bf16.mxu0 %v1541_v0 }
 0x115   :  { %1447 = vmatpush3.bf16.msra.mxu1 %v1541_v0 }
 0x116   :  { %1448 = vmatprep.subr.bf16.mxu1 %v1541_v0 }
 0x117   :  { %1461 = vmatpush3.bf16.msra.mxu0 %v1541_v0 }
 0x118   :  { %1462 = vmatprep.subr.bf16.mxu0 %v1541_v0 }
 0x119   :  { %1449 = vmatpush3.bf16.msra.mxu1 %v1541_v0 }
 0x11a   :  { %1450 = vmatprep.subr.bf16.mxu1 %v1541_v0 }
 0x11b   :  { %1463 = vmatpush3.bf16.msra.mxu0 %v1541_v0 }
 0x11c   :  { %1464 = vmatprep.subr.bf16.mxu0 %v1541_v0 }
 0x11d   :  { %1451 = vmatpush3.bf16.msra.mxu1 %v1541_v0 }
 0x11e   :  { %1335 = vmatprep.subr.msk.mxu1 %vm191_vm1, %v1542_v23 }
 0x11f   :  { %1465 = vmatpush3.bf16.msra.mxu0 %v1541_v0 }
 0x120   :  { %803 = vmatmul.mubr.f32.vlgmr.msra.gmra.mrb[12].mxu1 %v1719_v7  ;;  %1466 = vmatprep.subr.bf16.mxu0 %v1541_v0 }
 0x121   :  { %807 = vmatprep.mubr.f32.mxu1 %v1728_v11  ;;  %1336 = vmatpush3.msk.msra.mxu1 %vm191_vm1, %v1542_v23 }
 0x123   :  { %1467 = vmatpush3.bf16.msra.mxu0 %v1541_v0  ;;  %v1888_v0 = vld [vmem:[%s1937_s2] sm:$0xff] }
 0x124   :  { %808 = vmatmul.mubr.f32.gmra.mrb[14].mxu1 %v1745_v14  ;;  %v989_v33 = vadd.f32 %v987_v32, %v1888_v0  ;;  %vm979_vm2 = vcmp.ne.f32.partialorder %v1888_v0, 0.0 }
 0x125   :  { %1337 = vmatprep.mubr.msk.f32.mxu1 %vm85_vm0, %v1739_v5  ;;  %v574_v5 = vld [vmem:[%s1936_s1] sm:$0xff] }
 0x126   :  { %878 = vmatmul.mubr.f32.vlgmr.msra.gmra.mrb[14].mxu0 %v1723_v9  ;;  %991 = vst.msk [vmem:[%s1939_s4] sm:$0xff] %vm85_vm0, %v989_v33 }
 0x127   :  { %882 = vmatprep.mubr.f32.mxu0 %v1734_v12 }
 0x128   :  { %1338 = vmatmul.mubr.msk.f32.vlgmr.msra.gmra.mrb[16].mxu1 %vm85_vm0, %v1760_v18 }
 0x12a   :  { %883 = vmatmul.mubr.f32.gmra.mrb[16].mxu0 %v1750_v15  ;;  %v576_v15 = vsub.f32 %v574_v5, %v1656_v37 }
 0x191   :  { %v1052_v34 = vpop.f32.mrb[0].mxu0 }
 0x192   :  { %v1053_v35 = vpop.f32.mrb[1].mxu0  ;;  %v1090_v36 = vpop.f32.mrb[0].mxu1 }
 0x193   :  { %v1054_v38 = vadd.f32 %v1053_v35, %v1052_v34  ;;  %v1091_v42 = vpop.f32.mrb[1].mxu1 }
 0x194   :  { %v1092_v44 = vadd.f32 %v1091_v42, %v1090_v36 }
 0x195   :  { %v1055_v45 = vpop.f32.mrb[2].mxu0 }
 0x196   :  { %v337_v46 = vadd.f32 %v1092_v44, %v1054_v38  ;;  %v1093_v47 = vpop.f32.mrb[2].mxu1  ;;  %v1056_v48 = vpop.f32.mrb[3].mxu0 }
 0x197   :  { %v1057_v49 = vadd.f32 %v1056_v48, %v1055_v45  ;;  %v1094_v50 = vpop.f32.mrb[3].mxu1 }
 0x198   :  { %v1095_v51 = vadd.f32 %v1094_v50, %v1093_v47 }
 0x19a   :  { %v342_v52 = vadd.f32 %v1095_v51, %v1057_v49 }
 0x1b1   :  { %v1128_v53 = vpop.f32.mrb[4].mxu0 }
 0x1b2   :  { %v1166_v54 = vpop.f32.mrb[4].mxu1  ;;  %v1129_v55 = vpop.f32.mrb[5].mxu0 }
 0x1b3   :  { %v1130_v56 = vadd.f32 %v1129_v55, %v1128_v53  ;;  %v1167_v57 = vpop.f32.mrb[5].mxu1 }
 0x1b4   :  { %v1168_v58 = vadd.f32 %v1167_v57, %v1166_v54 }
 0x1b5   :  { %v412_v59 = vadd.f32 %v1130_v56, %v337_v46  ;;  %v1131_v60 = vpop.f32.mrb[6].mxu0 }
 0x1b6   :  { %v1169_v61 = vpop.f32.mrb[6].mxu1  ;;  %v1132_v62 = vpop.f32.mrb[7].mxu0 }
 0x1b7   :  { %v1133_v63 = vadd.f32 %v1132_v62, %v1131_v60  ;;  %v1170_v1 = vpop.f32.mrb[7].mxu1  ;;  %v487_v2 = vadd.f32 %v1168_v58, %v412_v59 }
 0x1b8   :  { %v1171_v3 = vadd.f32 %v1170_v1, %v1169_v61 }
 0x1b9   :  { %v417_v4 = vadd.f32 %v1133_v63, %v342_v52  ;;  %v1334_v6 = vpop.f32.mrb[8].mxu0 }
 0x1ba   :  { %v561_v7 = vpop.f32.mrb[9].mxu0 }
 0x1bb   :  { %v492_v9 = vadd.f32 %v1171_v3, %v417_v4  ;;  %v562_v11 = vadd.f32 %v561_v7, %v487_v2  ;;  %v977_v3 = vld [vmem:[%s1938_s3] sm:$0xff] }
 0x1bd   :  { %v567_v12 = vadd.f32 %v1334_v6, %v492_v9  ;;  %1510 = vlog2.f32 %v562_v11 }
 0x1bf   :  { %1512 = vlog2.f32 %v567_v12  ;;  %v978_v12 = vld [vmem:[%s1938_s3 + $0x8] sm:$0xff] }
 0x1c7   :  { %v1511_v8 = vpop.eup %1510 }
 0x1c8   :  { %v571_v14 = vmul.f32 0.6931472, %v1511_v8 }
 0x1c9   :  { %v1513_v10 = vpop.eup %1512 }
 0x1ca   :  { %v573_v16 = vmul.f32 0.6931472, %v1513_v10  ;;  %v578_v18 = vsub.f32 %v576_v15, %v571_v14  ;;  %v963_v52 = vmul.f32 1025.0, %v571_v14 }
 0x1cc   :  { %v579_v19 = vsub.f32 %v577_v17, %v573_v16  ;;  %v964_v56 = vmul.f32 1025.0, %v573_v16  ;;  %v580_v57 = vmul.f32 0.89990234, %v578_v18 }
 0x1ce   :  { %v581_v62 = vmul.f32 0.89990234, %v579_v19 }
 0x1d3   :  { %v1207_v20 = vpop.f32.mrb[8].mxu1 }
 0x1d4   :  { %v1208_v21 = vpop.f32.mrb[9].mxu1 }
 0x1d5   :  { %v1209_v22 = vadd.f32 %v1208_v21, %v1207_v20 }
 0x1d7   :  { %v1210_v23 = vpop.f32.mrb[10].mxu1 }
 0x1d8   :  { %v1211_v24 = vpop.f32.mrb[11].mxu1 }
 0x1d9   :  { %v1212_v25 = vadd.f32 %v1211_v24, %v1210_v23  ;;  %v1245_v26 = vpop.f32.mrb[10].mxu0 }
 0x1da   :  { %v1246_v27 = vpop.f32.mrb[11].mxu0 }
 0x1db   :  { %v1247_v28 = vadd.f32 %v1246_v27, %v1245_v26 }
 0x1dd   :  { %v730_v29 = vadd.f32 %v1247_v28, %v1209_v22  ;;  %v1248_v30 = vpop.f32.mrb[12].mxu0 }
 0x1de   :  { %v1249_v31 = vpop.f32.mrb[13].mxu0 }
 0x1df   :  { %v1250_v32 = vadd.f32 %v1249_v31, %v1248_v30 }
 0x1e1   :  { %v735_v37 = vadd.f32 %v1250_v32, %v1212_v25 }
 0x1f3   :  { %v1283_v33 = vpop.f32.mrb[12].mxu1 }
 0x1f4   :  { %v1284_v34 = vpop.f32.mrb[13].mxu1 }
 0x1f5   :  { %v1285_v35 = vadd.f32 %v1284_v34, %v1283_v33 }
 0x1f7   :  { %v805_v41 = vadd.f32 %v1285_v35, %v730_v29  ;;  %v1286_v36 = vpop.f32.mrb[14].mxu1 }
 0x1f8   :  { %v1287_v38 = vpop.f32.mrb[15].mxu1 }
 0x1f9   :  { %v1288_v40 = vadd.f32 %v1287_v38, %v1286_v36  ;;  %v1321_v42 = vpop.f32.mrb[14].mxu0 }
 0x1fa   :  { %v1322_v43 = vpop.f32.mrb[15].mxu0 }
 0x1fb   :  { %v810_v44 = vadd.f32 %v1288_v40, %v735_v37  ;;  %v1323_v45 = vadd.f32 %v1322_v43, %v1321_v42  ;;  %v1339_v46 = vpop.f32.mrb[16].mxu1 }
 0x1fc   :  { %v954_v47 = vpop.f32.mrb[17].mxu1 }
 0x1fd   :  { %v880_v48 = vadd.f32 %v1323_v45, %v805_v41  ;;  %v1324_v49 = vpop.f32.mrb[16].mxu0 }
 0x1fe   :  { %v1325_v50 = vpop.f32.mrb[17].mxu0 }
 0x1ff   :  { %v955_v51 = vadd.f32 %v954_v47, %v880_v48  ;;  %v1326_v53 = vadd.f32 %v1325_v50, %v1324_v49 }
 0x201   :  { %v965_v54 = vsub.f32 %v955_v51, %v963_v52  ;;  %v885_v55 = vadd.f32 %v1326_v53, %v810_v44 }
 0x203   :  { %v967_v58 = vmul.f32 9.765625e-05, %v965_v54  ;;  %v960_v59 = vadd.f32 %v1339_v46, %v885_v55 }
 0x205   :  { %v969_v60 = vadd.f32 %v967_v58, %v580_v57  ;;  %v966_v61 = vsub.f32 %v960_v59, %v964_v56 }
 0x207   :  { %v971_v63 = vsub.f32 0.0, %v969_v60  ;;  %v968_v1 = vmul.f32 9.765625e-05, %v966_v61 }
 0x209   :  { %v973_v2 = vadd.f32 -1.0182302, %v971_v63  ;;  %v970_v4 = vadd.f32 %v968_v1, %v581_v62 }
 0x20b   :  { %v981_v6 = vsel %vm979_vm2, %v973_v2, 0.0  ;;  %v972_v7 = vsub.f32 0.0, %v970_v4 }
 0x20c   :  { %v983_v9 = vadd.f32 %v981_v6, %v977_v3 }
 0x20d   :  { %v974_v11 = vadd.f32 -1.0182302, %v972_v7 }
 0x20e   :  { %985 = vst.msk [vmem:[%s1938_s3] sm:$0xff] %vm85_vm0, %v983_v9 }
 0x20f   :  { %v982_v0 = vsel %vm980_vm3, %v974_v11, 0.0 }
 0x210   :  { %v984_v5 = vadd.f32 %v982_v0, %v978_v12 }
 0x212   :  { %986 = vst.msk [vmem:[%s1938_s3 + $0x8] sm:$0xff] %vm85_vm0, %v984_v5 }
 0x213   :  { %1001 = vsyncpa [#allocation3], 1 }

</bundles_post_ra>
